<compile_context>
chip_gen: v7x
topology: tpu7x:2x2x1
jax: 0.10.0
libtpu: 0.0.40
codegen_flags: <defaults>
</compile_context>

<pallas_src>
import jax
import jax.numpy as jnp
from jax.experimental import pallas as pl
from jax.experimental.pallas import tpu as pltpu


def _round_up(x, m):
    return (x + m - 1) // m * m


def _linear_kernel(x_ref, w_ref, b_ref, o_ref):
    # Hot path: MXU GEMM with f32 accumulation, fused bias add epilogue.
    acc = jnp.dot(x_ref[...], w_ref[...], preferred_element_type=jnp.float32)
    o_ref[...] = (acc + b_ref[...]).astype(o_ref.dtype)


def pallas_linear(x, weight, bias):
    """PyTorch nn.Linear semantics: y = x @ weight.T + bias.

    weight: (out_features, in_features), bias: (out_features,), x: (..., in_features)
    """
    orig_shape = x.shape
    out_features, in_features = weight.shape
    assert orig_shape[-1] == in_features

    x2 = x.reshape(-1, in_features)
    M = x2.shape[0]

    # Lane-dense padding: K and N up to multiples of 128, M to a sublane-aligned
    # tile size that divides the padded extent evenly.
    K_pad = _round_up(in_features, 128)
    N_pad = _round_up(out_features, 128)
    M8 = _round_up(M, 8)
    tm = M8 if M8 <= 128 else 128
    M_pad = _round_up(M, tm)

    x_p = jnp.zeros((M_pad, K_pad), x2.dtype).at[:M, :in_features].set(x2)
    w_p = (
        jnp.zeros((K_pad, N_pad), weight.dtype)
        .at[:in_features, :out_features]
        .set(weight.T)
    )
    b_p = jnp.zeros((1, N_pad), bias.dtype).at[0, :out_features].set(bias)

    grid = (M_pad // tm,)
    flops = 2 * M_pad * K_pad * N_pad
    bytes_accessed = 4 * (x_p.size + w_p.size + b_p.size + M_pad * N_pad)

    out = pl.pallas_call(
        _linear_kernel,
        out_shape=jax.ShapeDtypeStruct((M_pad, N_pad), x2.dtype),
        grid=grid,
        in_specs=[
            pl.BlockSpec((tm, K_pad), lambda i: (i, 0)),      # activations: tiled over M
            pl.BlockSpec((K_pad, N_pad), lambda i: (0, 0)),   # weight: resident
            pl.BlockSpec((1, N_pad), lambda i: (0, 0)),       # bias: resident
        ],
        out_specs=pl.BlockSpec((tm, N_pad), lambda i: (i, 0)),
        compiler_params=pltpu.CompilerParams(
            dimension_semantics=("parallel",),
        ),
        cost_estimate=pl.CostEstimate(
            flops=flops, transcendentals=0, bytes_accessed=bytes_accessed
        ),
    )(x_p, w_p, b_p)

    y = out[:M, :out_features]
    return y.reshape(*orig_shape[:-1], out_features)


def my_model_forward(inp, fc1_weight, fc1_bias):
    # MyModel.forward: return self.fc1(inp)
    return pallas_linear(inp, fc1_weight, fc1_bias)


if __name__ == "__main__":
    in_features = out_features = 10
    batch = 16

    key = jax.random.PRNGKey(0)
    kx, kw, kb = jax.random.split(key, 3)
    x = jax.random.normal(kx, (batch, in_features), dtype=jnp.float32)

    # Deterministic PyTorch-like init: U(-1/sqrt(fan_in), 1/sqrt(fan_in))
    bound = 1.0 / (in_features ** 0.5)
    w = jax.random.uniform(
        kw, (out_features, in_features), jnp.float32, -bound, bound
    )
    b = jax.random.uniform(kb, (out_features,), jnp.float32, -bound, bound)

    out = jax.jit(my_model_forward)(x, w, b)
    out = jax.block_until_ready(out)

    # Reference: plain XLA linear (same semantics as torch.nn.Linear)
    ref = x @ w.T + b
    assert out.shape == (batch, out_features), out.shape
    assert jnp.allclose(out, ref, atol=1e-5, rtol=1e-5), "mismatch vs reference"

    print("KERNEL_OK")
</pallas_src>

<mosaic_0001>
module attributes {stable_mosaic.version = 11 : i64} {
  func.func @_linear_kernel(%arg0: i32, %arg1: memref<16x128xf32, #tpu.memory_space<vmem>>, %arg2: memref<128x128xf32, #tpu.memory_space<vmem>>, %arg3: memref<1x128xf32, #tpu.memory_space<vmem>>, %arg4: memref<16x128xf32, #tpu.memory_space<vmem>>) attributes {dimension_semantics = [#tpu.dimension_semantics<parallel>], iteration_bounds = array<i64: 1>, scalar_prefetch = 0 : i64, scratch_operands = 0 : i64, tpu.core_type = #tpu.core_type<tc>, window_params = [{transform_indices = @transform_0, window_bounds = array<i64: 16, 128>}, {pipeline_mode = #tpu.pipeline_mode<synchronous>, transform_indices = @transform_1, window_bounds = array<i64: 128, 128>}, {pipeline_mode = #tpu.pipeline_mode<synchronous>, transform_indices = @transform_2, window_bounds = array<i64: 1, 128>}, {transform_indices = @transform_3, window_bounds = array<i64: 16, 128>}]} {
    %c0 = arith.constant 0 : index
    %c0_0 = arith.constant 0 : index
    %0 = vector.load %arg1[%c0, %c0_0] : memref<16x128xf32, #tpu.memory_space<vmem>>, vector<16x128xf32>
    %c0_1 = arith.constant 0 : index
    %c0_2 = arith.constant 0 : index
    %1 = vector.load %arg2[%c0_1, %c0_2] : memref<128x128xf32, #tpu.memory_space<vmem>>, vector<128x128xf32>
    %cst = arith.constant dense<0.000000e+00> : vector<16x128xf32>
    %2 = tpu.matmul %0, %1, %cst {dimension_numbers = #tpu.dot_dimension_numbers<[1], [0], [0], [1], [0, 0, 1, 1], [], []>} : vector<16x128xf32>, vector<128x128xf32>, vector<16x128xf32> -> vector<16x128xf32>
    %c0_3 = arith.constant 0 : index
    %c0_4 = arith.constant 0 : index
    %3 = vector.load %arg3[%c0_3, %c0_4] : memref<1x128xf32, #tpu.memory_space<vmem>>, vector<1x128xf32>
    %4 = vector.broadcast %3 : vector<1x128xf32> to vector<16x128xf32>
    %5 = arith.addf %2, %4 : vector<16x128xf32>
    %c0_5 = arith.constant 0 : index
    %c0_6 = arith.constant 0 : index
    %6 = vector.load %arg4[%c0_5, %c0_6] : memref<16x128xf32, #tpu.memory_space<vmem>>, vector<16x128xf32>
    tpu.vector_store %arg4[%c0_5, %c0_6], %5 {strides = array<i32>} : memref<16x128xf32, #tpu.memory_space<vmem>>, vector<16x128xf32>,
    return
  }
  func.func @transform_0(%arg0: i32) -> (i32, i32) {
    %c0_i32 = arith.constant 0 : i32
    %c0_i32_0 = arith.constant 0 : i32
    return %arg0, %c0_i32 : i32, i32
  }
  func.func @transform_1(%arg0: i32) -> (i32, i32) {
    %c0_i32 = arith.constant 0 : i32
    %c0_i32_0 = arith.constant 0 : i32
    %c0_i32_1 = arith.constant 0 : i32
    return %c0_i32, %c0_i32_0 : i32, i32
  }
  func.func @transform_2(%arg0: i32) -> (i32, i32) {
    %c0_i32 = arith.constant 0 : i32
    %c0_i32_0 = arith.constant 0 : i32
    %c0_i32_1 = arith.constant 0 : i32
    return %c0_i32, %c0_i32_0 : i32, i32
  }
  func.func @transform_3(%arg0: i32) -> (i32, i32) {
    %c0_i32 = arith.constant 0 : i32
    %c0_i32_0 = arith.constant 0 : i32
    return %arg0, %c0_i32 : i32, i32
  }
}

</mosaic_0001>

<bundles_post_ra>
// kernel: my_model_forward.1
= control target key start
LH: loop header
LB: loop body
LE: loop exit
PB: predicated region body
PF: predicated region fallthrough
CT: control target
= control target key end

     0   :  { %s338_s0 = inlined_call_operand.vmem [shape: f32[16,128], index: 0, kind: input, shape index: {}]   ;;  %s339_s1 = inlined_call_operand.vmem [shape: f32[128,128], index: 1, kind: input, shape index: {}]   ;;  %s340_s2 = inlined_call_operand.vmem [shape: f32[1,128], index: 2, kind: input, shape index: {}]   ;;  %s341_s3 = inlined_call_operand.hbm [shape: f32[16,128], index: 3, kind: output, shape index: {}]  }
   0x1   :  { %v17_v0 = vld [vmem:[%s339_s1] sm:$0xff]  ;;  %v18_v1 = vld [vmem:[%s339_s1 + $0x8] sm:$0xff]  ;;  %v19_v2 = vld [vmem:[%s339_s1 + $0x10] sm:$0xff] }
   0x2   :  { %v187_v3 = vpack.c.bf16 %v18_v1, %v17_v0  ;;  %v20_v4 = vld [vmem:[%s339_s1 + $0x18] sm:$0xff]  ;;  %v21_v6 = vld [vmem:[%s339_s1 + $0x20] sm:$0xff]  ;;  %v22_v7 = vld [vmem:[%s339_s1 + $0x28] sm:$0xff] }
   0x3   :  { %v191_v5 = vpack.c.bf16 %v20_v4, %v19_v2  ;;  %v195_v8 = vpack.c.bf16 %v22_v7, %v21_v6  ;;  %v15_v9 = vld [vmem:[%s338_s0] sm:$0xff]  ;;  %v23_v10 = vld [vmem:[%s339_s1 + $0x30] sm:$0xff]  ;;  %v24_v11 = vld [vmem:[%s339_s1 + $0x38] sm:$0xff] }
   0x4   :  { %188 = vmatprep.subr.bf16.mxu0 %v187_v3  ;;  %184 = vmatprep.mubr.f32.mxu0 %v15_v9 }
   0x5   :  { %190 = vmatpush3.bf16.msra.mxu0 %v187_v3 }
   0x6   :  { %192 = vmatprep.subr.bf16.mxu0 %v191_v5 }
   0x7   :  { %8 = vsyncpa [#allocation3], 0  ;;  %v199_v12 = vpack.c.bf16 %v24_v11, %v23_v10  ;;  %v25_v13 = vld [vmem:[%s339_s1 + $0x40] sm:$0xff]  ;;  %v26_v14 = vld [vmem:[%s339_s1 + $0x48] sm:$0xff]  ;;  %s246_s23 = smov [#allocation2]  }
   0x8   :  { %v203_v15 = vpack.c.bf16 %v26_v14, %v25_v13  ;;  %v27_v16 = vld [vmem:[%s339_s1 + $0x50] sm:$0xff]  ;;  %v28_v17 = vld [vmem:[%s339_s1 + $0x58] sm:$0xff]  ;;  %v29_v19 = vld [vmem:[%s339_s1 + $0x60] sm:$0xff]  ;;  %s122_s24 = sshll.u32 %s246_s23, 4  ;;  %s123_s24 = int_to_ptr.vmem [resolvable:$true] %s122_s24 }
   0x9   :  { %194 = vmatpush3.bf16.msra.mxu0 %v191_v5  ;;  %v207_v18 = vpack.c.bf16 %v28_v17, %v27_v16  ;;  %v30_v20 = vld [vmem:[%s339_s1 + $0x68] sm:$0xff]  ;;  %v31_v22 = vld [vmem:[%s339_s1 + $0x70] sm:$0xff]  ;;  %v32_v23 = vld [vmem:[%s339_s1 + $0x78] sm:$0xff]  ;;  %s222_s1 = scalar_lea.vmem %s123_s24, 256  ;;  %p227_p1 = scmp.lt.s32.totalorder %s123_s24, %s123_s24 }
   0xa   :  { %196 = vmatprep.subr.bf16.mxu0 %v195_v8  ;;  %v211_v21 = vpack.c.bf16 %v30_v20, %v29_v19  ;;  %v215_v24 = vpack.c.bf16 %v32_v23, %v31_v22  ;;  %v16_v25 = vld [vmem:[%s338_s0 + $0x8] sm:$0xff]  ;;  %v133_v26 = vld [vmem:[%s340_s2] ss:$0 sm:$0xff]  ;;  %p223_p0 = scmp.ne.s32.totalorder %s123_s24, %s222_s1  ;;  %p228_p2 = scmp.lt.s32.totalorder %s222_s1, %s222_s1 }
   0xc   :  { %p229_p3 = por %p228_p2, %p227_p1 }
   0xd   :  { %198 = vmatpush3.bf16.msra.mxu0 %v195_v8 }
   0xe   :  { %200 = vmatprep.subr.bf16.mxu0 %v199_v12  ;;  %p230_p4 = pnand %p229_p3, %p223_p0 }
  0x11   :  { %202 = vmatpush3.bf16.msra.mxu0 %v199_v12 }
  0x12   :  { %204 = vmatprep.subr.bf16.mxu0 %v203_v15 }
  0x15   :  { %206 = vmatpush3.bf16.msra.mxu0 %v203_v15 }
  0x16   :  { %208 = vmatprep.subr.bf16.mxu0 %v207_v18 }
  0x19   :  { %210 = vmatpush3.bf16.msra.mxu0 %v207_v18 }
  0x1a   :  { %212 = vmatprep.subr.bf16.mxu0 %v211_v21 }
  0x1d   :  { %214 = vmatpush3.bf16.msra.mxu0 %v211_v21 }
  0x1e   :  { %216 = vmatprep.subr.bf16.mxu0 %v215_v24 }
  0x21   :  { %218 = vmatpush3.bf16.msra.mxu0 %v215_v24 }
  0x24   :  { %185 = vmatmul.mubr.f32.vlgmr.msra.gmra.mrb[0].mxu0 %v16_v25 }
  0xf7   :  { %v186_v27 = vpop.f32.mrb[0].mxu0 }
  0xf8   :  { %v112_v28 = vadd.f32 %v186_v27, %v133_v26  ;;  %v106_v29 = vpop.f32.mrb[1].mxu0 }
  0xf9   :  { %v107_v30 = vadd.f32 %v133_v26, %v106_v29 }
  0xfa   :  { %116 = vst [vmem:[#allocation2 + $0x8] sm:$0xff] %v112_v28 }
  0xfb   :  { %115 = vst [vmem:[#allocation2] sm:$0xff] %v107_v30 }
  0xfc   :  { %233 = shalt.err (!%p230_p4)
}
  0xfd   :  { %s234_s2 = scalar_lea.hbm %s341_s3, 256 }
  0xfe   :  { %p235_p5 = scmp.ne.s32.totalorder %s341_s3, %s234_s2  ;;  %p238_p6 = scmp.lt.u32.totalorder %s234_s2, %s341_s3 }
 0x100   :  { %p240_p7 = pnand %p238_p6, %p235_p5 }
 0x102   :  { %243 = shalt.err (!%p240_p7)
}
 0x103   :  { %s247_s30 = smov 128   ;;  %s248_s4 = smov 8  }
 0x104   :  { %128 = dma.vmem_to_hbm [thread:$0]  %s123_s24, 256, %s341_s3, [#allocation3], %s247_s30, %s247_s30, %s248_s4  }
 0x105   :  { %244 = dma.done.wait [#allocation3], 256  }
 0x106   :  { %245 = vsyncadd [#allocation3], 4294967040 }
 0x107   :  { %132 = vsyncpa [#allocation3], 1 }

</bundles_post_ra>
